<compile_context>
chip_gen: v6e
topology: v6e:2x2x1
jax: 0.10.0
libtpu: 0.0.40
codegen_flags: <defaults>
</compile_context>

<pallas_src>
import functools

import jax
import jax.numpy as jnp
import numpy as np
from jax.experimental import pallas as pl
from jax.experimental.pallas import tpu as pltpu


# ---------------------------------------------------------------------------
# Kernel: per-row global max and mean over the lane (H*W) axis.
# Output block layout: out[:, 0] = max, out[:, 1] = mean.
# ---------------------------------------------------------------------------
def _pool_kernel(x_ref, out_ref, *acc, hw, tm, need_mask, single_step):
    inv_hw = jnp.float32(1.0 / hw)
    x = x_ref[...].astype(jnp.float32)                      # (tr, tm)

    if single_step:
        # Whole H*W axis fits in one lane tile (tm == hw): no accumulators,
        # no init/finalize branches, write the result directly.
        out_ref[:, 0:1] = jnp.max(x, axis=-1, keepdims=True).astype(out_ref.dtype)
        out_ref[:, 1:2] = (jnp.sum(x, axis=-1, keepdims=True)
                           * inv_hw).astype(out_ref.dtype)
        return

    mx_acc, sm_acc = acc
    j = pl.program_id(1)                   # reduction axis (H*W tiles), last grid dim
    last = pl.num_programs(1) - 1

    @pl.when(j == 0)
    def _():
        # NOTE: -inf init assumes floating-point input (true for this module).
        mx_acc[...] = jnp.full(mx_acc.shape, -jnp.inf, mx_acc.dtype)
        sm_acc[...] = jnp.zeros(sm_acc.shape, sm_acc.dtype)

    def accumulate(x_mx, x_sm):
        # Reduce the tile to a (tr, 1) column first (VPU folding across the
        # tm/128 lane chunks + one XLU lane-reduce); accumulator traffic per
        # step is then a negligible (tr, 1) read-modify-write.
        mx_acc[...] = jnp.maximum(mx_acc[...],
                                  jnp.max(x_mx, axis=-1, keepdims=True))
        sm_acc[...] = sm_acc[...] + jnp.sum(x_sm, axis=-1, keepdims=True)

    if need_mask:
        # Only the last H*W tile can read past the array: keep the mask work
        # (iota + compare + 2x where) off the hot path for every other tile.
        @pl.when(j < last)
        def _():
            accumulate(x, x)

        @pl.when(j == last)
        def _():
            col = j * tm + jax.lax.broadcasted_iota(jnp.int32, x.shape, 1)
            valid = col < hw
            accumulate(jnp.where(valid, x, -jnp.inf), jnp.where(valid, x, 0.0))
    else:
        accumulate(x, x)

    @pl.when(j == last)
    def _():
        out_ref[:, 0:1] = mx_acc[...].astype(out_ref.dtype)
        out_ref[:, 1:2] = (sm_acc[...] * inv_hw).astype(out_ref.dtype)


# ---------------------------------------------------------------------------
# Tile selection.
# ---------------------------------------------------------------------------
def _choose_row_tile(nc, cap, pack, min_split=64):
    """Sublane-axis tile.

    Prefer a divisor of `nc` that is a multiple of the dtype's sublane packing,
    fits under `cap`, and yields >= 2 row tiles (so the "parallel" grid axis can
    shard across the two TensorCores on v7x).  Otherwise the largest such
    divisor; otherwise the full axis (always a legal block shape).
    """
    if nc <= pack:
        return nc
    best_div = 0
    best_split = 0
    t = (min(cap, nc) // pack) * pack
    while t >= pack:
        if nc % t == 0:
            if best_div == 0:
                best_div = t            # largest pack-multiple divisor <= cap
            if nc // t >= 2:
                best_split = t          # largest one that also gives >= 2 tiles
                break
        t -= pack
    if best_split >= min_split:
        return best_split
    if best_div:
        return best_div
    return nc


def _choose_col_tile(hw, cap):
    """Lane-axis tile: full axis if it fits, else a large multiple of 128."""
    if hw <= cap:
        return hw
    return max(128, (cap // 128) * 128)


def _global_max_avg(x2, *, tr_cap=512, tm_cap=2048):
    """x2: (N*C, H*W) -> (N*C, 2) with [:, 0] = max, [:, 1] = mean (x2.dtype)."""
    NC, HW = x2.shape
    pack = max(8, 32 // max(1, np.dtype(x2.dtype).itemsize))   # 8/16/32 sublane packing
    tr = _choose_row_tile(NC, tr_cap, pack)
    tm = _choose_col_tile(HW, tm_cap)
    need_mask = (HW % tm) != 0
    grid = (pl.cdiv(NC, tr), pl.cdiv(HW, tm))          # tr divides NC by construction
    single_step = (grid[1] == 1) and not need_mask

    kernel = functools.partial(_pool_kernel, hw=HW, tm=tm,
                               need_mask=need_mask, single_step=single_step)
    scratch = [] if single_step else [pltpu.VMEM((tr, 1), jnp.float32),   # running max
                                      pltpu.VMEM((tr, 1), jnp.float32)]  # running sum

    return pl.pallas_call(
        kernel,
        out_shape=jax.ShapeDtypeStruct((NC, 2), x2.dtype),
        grid_spec=pltpu.PrefetchScalarGridSpec(
            num_scalar_prefetch=0,
            grid=grid,
            in_specs=[pl.BlockSpec((tr, tm), lambda i, j: (i, j))],
            out_specs=pl.BlockSpec((tr, 2), lambda i, j: (i, 0)),
            scratch_shapes=scratch,
        ),
        compiler_params=pltpu.CompilerParams(
            dimension_semantics=("parallel", "arbitrary"),
        ),
    )(x2)


# ---------------------------------------------------------------------------
# AdaptiveConcatPool2d forward (output_size = 1, the module default).
# ---------------------------------------------------------------------------
def adaptive_concat_pool2d(x, *, tr_cap=512, tm_cap=2048):
    """(N, C, H, W) -> (N, 2*C, 1, 1): [global max pool, global avg pool]."""
    # TODO(synk): general output_size > 1 (adaptive spatial binning) not
    # implemented; this covers the module default sz=1 used by fastai.
    N, C, H, W = x.shape
    x2 = x.reshape(N * C, H * W)          # free contiguous view, no transpose
    out = _global_max_avg(x2, tr_cap=tr_cap, tm_cap=tm_cap)        # (N*C, 2)
    # (N, C, 2) -> (N, 2, C) -> (N, 2C, 1, 1): max channels first, then avg.
    y = jnp.transpose(out.reshape(N, C, 2), (0, 2, 1)).reshape(N, 2 * C, 1, 1)
    return y


def _reference(x):
    xn = np.asarray(x, np.float32)
    mp = xn.max(axis=(2, 3), keepdims=True)
    ap = xn.mean(axis=(2, 3), keepdims=True)
    return np.concatenate([mp, ap], axis=1)


if __name__ == "__main__":
    key = jax.random.PRNGKey(0)

    # Small shape consistent with the module: batch=2, channels=4, 16x16.
    # Exercises the single-tile fast path (H*W = 256 <= tm_cap).
    N, C, H, W = 2, 4, 16, 16
    x = jax.random.normal(key, (N, C, H, W), dtype=jnp.float32)
    y = jax.block_until_ready(adaptive_concat_pool2d(x))
    assert y.shape == (N, 2 * C, 1, 1)
    np.testing.assert_allclose(np.asarray(y), _reference(x), rtol=1e-5, atol=1e-6)

    # Multi-tile reduction, no remainder (H*W = 256, tm = 128 -> grid[1] = 2).
    y1 = jax.block_until_ready(adaptive_concat_pool2d(x, tm_cap=128))
    np.testing.assert_allclose(np.asarray(y1), _reference(x), rtol=1e-5, atol=1e-6)

    # Multi-tile + masked remainder path (H*W = 169, tm = 128).
    x2 = jax.random.normal(jax.random.PRNGKey(1), (2, 4, 13, 13), jnp.float32)
    y2 = jax.block_until_ready(adaptive_concat_pool2d(x2, tm_cap=128))
    np.testing.assert_allclose(np.asarray(y2), _reference(x2), rtol=1e-5, atol=1e-6)

    # Larger channel count: exercises the >=2 row-tile (megacore) split.
    x3 = jax.random.normal(jax.random.PRNGKey(2), (2, 128, 16, 16), jnp.float32)
    y3 = jax.block_until_ready(adaptive_concat_pool2d(x3))
    np.testing.assert_allclose(np.asarray(y3), _reference(x3), rtol=1e-5, atol=1e-6)

    print("KERNEL_OK")
</pallas_src>

<mosaic_0001>
module attributes {stable_mosaic.version = 11 : i64} {
  func.func @_pool_kernel(%arg0: i32, %arg1: i32, %arg2: memref<8x256xf32, #tpu.memory_space<vmem>>, %arg3: memref<8x2xf32, #tpu.memory_space<vmem>>) attributes {dimension_semantics = [#tpu.dimension_semantics<parallel>, #tpu.dimension_semantics<arbitrary>], iteration_bounds = array<i64: 1, 1>, scalar_prefetch = 0 : i64, scratch_operands = 0 : i64, tpu.core_type = #tpu.core_type<tc>, window_params = [{transform_indices = @transform_0, window_bounds = array<i64: 8, 256>}, {transform_indices = @transform_1, window_bounds = array<i64: 8, 2>}]} {
    %c0 = arith.constant 0 : index
    %c0_0 = arith.constant 0 : index
    %0 = vector.load %arg2[%c0, %c0_0] : memref<8x256xf32, #tpu.memory_space<vmem>>, vector<8x256xf32>
    %cst = arith.constant dense<0xFF800000> : vector<8xf32>
    %1 = vector.multi_reduction <maximumf>, %0, %cst [1] : vector<8x256xf32> to vector<8xf32>
    %2 = vector.shape_cast %1 : vector<8xf32> to vector<8x1xf32>
    %c0_1 = arith.constant 0 : index
    %c0_2 = arith.constant 0 : index
    %3 = vector.load %arg3[%c0_1, %c0_2] : memref<8x2xf32, #tpu.memory_space<vmem>>, vector<8x1xf32>
    tpu.vector_store %arg3[%c0_1, %c0_2], %2 {strides = array<i32>} : memref<8x2xf32, #tpu.memory_space<vmem>>, vector<8x1xf32>,
    %cst_3 = arith.constant dense<0.000000e+00> : vector<8xf32>
    %4 = vector.multi_reduction <add>, %0, %cst_3 [1] : vector<8x256xf32> to vector<8xf32>
    %5 = vector.shape_cast %4 : vector<8xf32> to vector<8x1xf32>
    %cst_4 = arith.constant 3.906250e-03 : f32
    %6 = vector.broadcast %cst_4 : f32 to vector<8x1xf32>
    %7 = arith.mulf %5, %6 : vector<8x1xf32>
    %c0_5 = arith.constant 0 : index
    %c1 = arith.constant 1 : index
    %8 = vector.load %arg3[%c0_5, %c1] : memref<8x2xf32, #tpu.memory_space<vmem>>, vector<8x1xf32>
    tpu.vector_store %arg3[%c0_5, %c1], %7 {strides = array<i32>} : memref<8x2xf32, #tpu.memory_space<vmem>>, vector<8x1xf32>,
    return
  }
  func.func @transform_0(%arg0: i32, %arg1: i32) -> (i32, i32) {
    %c0_i32 = arith.constant 0 : i32
    return %arg0, %arg1 : i32, i32
  }
  func.func @transform_1(%arg0: i32, %arg1: i32) -> (i32, i32) {
    %c0_i32 = arith.constant 0 : i32
    %c0_i32_0 = arith.constant 0 : i32
    return %arg0, %c0_i32 : i32, i32
  }
}

</mosaic_0001>

<bundles_post_ra>
// kernel: tpu_custom_call.1
= control target key start
LH: loop header
LB: loop body
LE: loop exit
PB: predicated region body
PF: predicated region fallthrough
CT: control target
= control target key end

     0   :  { %6 = vsyncpa [#allocation3], 0  ;;  %s61_s6 = smov [#allocation2]   ;;  %s81_s0 = inlined_call_operand.hbm [shape: f32[8,256], index: 0, kind: input, shape index: {}]   ;;  %s82_s1 = inlined_call_operand.vmem [shape: f32[8,2], index: 1, kind: output, shape index: {}]  }
   0x1   :  { %s13_s7 = sshll.u32 %s61_s6, 4  ;;  %s14_s7 = int_to_ptr.vmem [resolvable:$true] %s13_s7 }
   0x2   :  { %s47_s8 = scalar_lea.vmem %s14_s7, 256  ;;  %p52_p1 = scmp.lt.s32.totalorder %s14_s7, %s14_s7 }
   0x3   :  { %p48_p0 = scmp.ne.s32.totalorder %s14_s7, %s47_s8  ;;  %p53_p2 = scmp.lt.s32.totalorder %s47_s8, %s47_s8 }
   0x5   :  { %p54_p3 = por %p53_p2, %p52_p1 }
   0x7   :  { %p55_p4 = pnand %p54_p3, %p48_p0 }
   0x9   :  { %58 = shalt.err (!%p55_p4)
}
   0xa   :  { %16 = dma.hbm_to_vmem [thread:$0]  %s81_s0, 256, %s14_s7, [#allocation3]  }
   0xb   :  { %59 = dma.done.wait [#allocation3], 256  }
   0xc   :  { %60 = vsyncadd [#allocation3], 4294967040  ;;  %v20_v0 = vld [vmem:[#allocation2] sm:$0xff]  ;;  %v21_v1 = vld [vmem:[#allocation2 + $0x8] sm:$0xff]  ;;  %vm25_vm0 = vcmask 7168   ;;  %vm31_vm1 = vcmask 15368  }
   0xd   :  { %v27_v2 = vadd.f32 %v21_v1, %v20_v0  ;;  %v22_v3 = vmax.f32 %v20_v0, %v21_v1 }
   0xf   :  { %28 = vadd.xlane.f32.xlu0 %v27_v2 }
  0x13   :  { %23 = vmax.xlane.f32.xlu0 %v22_v3 }
  0x98   :  { %v29_v4 = vpop.xlane.xlu0 %28 }
  0x99   :  { %v30_v5 = vmul.f32 0.00390625, %v29_v4 }
  0x9c   :  { %v24_v6 = vpop.xlane.xlu0 %23 }
  0x9d   :  { %26 = vst.msk [vmem:[%s82_s1] sm:$0xff] %vm25_vm0, %v24_v6 }
  0x9e   :  { %32 = vst.msk [vmem:[%s82_s1] sm:$0xff] %vm31_vm1, %v30_v5 }
  0x9f   :  { %37 = vsyncpa [#allocation3], 1 }

</bundles_post_ra>
